<compile_context>
chip_gen: v5e
topology: v5e:2x2
jax: 0.10.0
libtpu: 0.0.40
codegen_flags: <defaults>
</compile_context>

<pallas_src>
import jax
import jax.numpy as jnp
from jax.experimental import pallas as pl
from jax.experimental.pallas import tpu as pltpu


def _decoder_kernel(x_ref, w_ref, b_ref, o_ref):
    # x_ref: (tile_B, C*H)   w_ref: (C*H, C*F)   b_ref: (1, C*F)   o_ref: (tile_B, C*F)
    y = jnp.dot(x_ref[...], w_ref[...], preferred_element_type=jnp.float32)
    o_ref[...] = (y + b_ref[...]).astype(o_ref.dtype)


def decoder_forward(encoded, weight, bias, *, tile_b=1024):
    """encoded: (B, C, H); weight: (C, H, F); bias: (C, F).

    Returns (B, F, C), matching the PyTorch forward
    (dropout in eval mode -> per-channel fc1 -> permute(0, 2, 1)).
    """
    B, C, H = encoded.shape
    Cw, Hw, F = weight.shape
    assert (C, H) == (Cw, Hw) and bias.shape == (C, F)

    # Dropout in eval mode is identity -> pass-through.
    # Contiguous reshapes only (no HBM transposes).
    x_flat = encoded.reshape(B, C * H)                                  # (B, C*H)
    # Block-diagonal weight: one MXU contraction instead of 7 tiny dots.
    # Column order is channel-major, matching bias.reshape(1, C*F).
    w_bd = jax.scipy.linalg.block_diag(*[weight[c] for c in range(C)]) # (C*H, C*F)
    b_flat = bias.reshape(1, C * F)                                     # (1, C*F)

    # Tile the batch axis. For small B the block equals the full array
    # (single grid step, no (8,128) constraint issues); for large B use a
    # multiple-of-8 tile and pad the remainder with zero rows.
    tb = min(tile_b, B)
    if B > tb:
        pad = (-B) % tb
        if pad:
            x_flat = jnp.pad(x_flat, ((0, pad), (0, 0)))
    Bp = x_flat.shape[0]
    grid = (Bp // tb,)

    out_flat = pl.pallas_call(
        _decoder_kernel,
        out_shape=jax.ShapeDtypeStruct((Bp, C * F), encoded.dtype),
        grid_spec=pltpu.PrefetchScalarGridSpec(
            num_scalar_prefetch=0,
            grid=grid,
            in_specs=[
                pl.BlockSpec((tb, C * H), lambda i: (i, 0)),   # per-tile rows
                pl.BlockSpec((C * H, C * F), lambda i: (0, 0)),  # full weight, DMA'd once
                pl.BlockSpec((1, C * F), lambda i: (0, 0)),      # full bias, DMA'd once
            ],
            out_specs=pl.BlockSpec((tb, C * F), lambda i: (i, 0)),
        ),
        compiler_params=pltpu.CompilerParams(
            dimension_semantics=("parallel",)),
    )(x_flat, w_bd, b_flat)

    out_flat = out_flat[:B]
    # (B, C*F) -> (B, C, F) -> (B, F, C): the module's permute(0, 2, 1).
    # Kept in the wrapper so the kernel's HBM write stays lane-dense.
    return jnp.transpose(out_flat.reshape(B, C, F), (0, 2, 1))


def _reference_forward(encoded, weight, bias):
    # Pure-JAX reference: per-channel linear then permute(0, 2, 1).
    y = jnp.einsum("bch,chf->bcf", encoded, weight) + bias[None, :, :]
    return jnp.transpose(y, (0, 2, 1))


if __name__ == "__main__":
    B = 2           # batch
    C = 7           # n_channels (fixed in the module)
    H = 32          # n_hidden
    F = 16          # n_features

    key = jax.random.PRNGKey(0)
    k_x, k_w, k_b = jax.random.split(key, 3)

    encoded = jax.random.normal(k_x, (B, C, H), dtype=jnp.float32)
    weight = (jax.random.normal(k_w, (C, H, F), dtype=jnp.float32)
              * (1.0 / jnp.sqrt(H)))
    bias = jax.random.normal(k_b, (C, F), dtype=jnp.float32) * 0.01

    # Primary (tiny) case: single grid step, block == full array.
    out = decoder_forward(encoded, weight, bias)
    out = jax.block_until_ready(out)
    ref = _reference_forward(encoded, weight, bias)
    assert out.shape == (B, F, C), out.shape
    assert jnp.allclose(out, ref, atol=1e-5, rtol=1e-5), "mismatch vs reference"

    # Secondary case: exercise the batched / padded B-grid path (grid=2, parallel).
    B2 = 9
    encoded2 = jax.random.normal(jax.random.PRNGKey(1), (B2, C, H), dtype=jnp.float32)
    out2 = jax.block_until_ready(decoder_forward(encoded2, weight, bias, tile_b=8))
    ref2 = _reference_forward(encoded2, weight, bias)
    assert out2.shape == (B2, F, C), out2.shape
    assert jnp.allclose(out2, ref2, atol=1e-5, rtol=1e-5), "mismatch vs reference (batched)"

    print("KERNEL_OK")
</pallas_src>

<mosaic_0001>
module attributes {stable_mosaic.version = 11 : i64} {
  func.func @_decoder_kernel(%arg0: i32, %arg1: memref<2x224xf32, #tpu.memory_space<vmem>>, %arg2: memref<224x112xf32, #tpu.memory_space<vmem>>, %arg3: memref<1x112xf32, #tpu.memory_space<vmem>>, %arg4: memref<2x112xf32, #tpu.memory_space<vmem>>) attributes {dimension_semantics = [#tpu.dimension_semantics<parallel>], iteration_bounds = array<i64: 1>, scalar_prefetch = 0 : i64, scratch_operands = 0 : i64, tpu.core_type = #tpu.core_type<tc>, window_params = [{transform_indices = @transform_0, window_bounds = array<i64: 2, 224>}, {pipeline_mode = #tpu.pipeline_mode<synchronous>, transform_indices = @transform_1, window_bounds = array<i64: 224, 112>}, {pipeline_mode = #tpu.pipeline_mode<synchronous>, transform_indices = @transform_2, window_bounds = array<i64: 1, 112>}, {transform_indices = @transform_3, window_bounds = array<i64: 2, 112>}]} {
    %c0 = arith.constant 0 : index
    %c0_0 = arith.constant 0 : index
    %0 = vector.load %arg1[%c0, %c0_0] : memref<2x224xf32, #tpu.memory_space<vmem>>, vector<2x224xf32>
    %c0_1 = arith.constant 0 : index
    %c0_2 = arith.constant 0 : index
    %1 = vector.load %arg2[%c0_1, %c0_2] : memref<224x112xf32, #tpu.memory_space<vmem>>, vector<224x112xf32>
    %cst = arith.constant dense<0.000000e+00> : vector<2x112xf32>
    %2 = tpu.matmul %0, %1, %cst {dimension_numbers = #tpu.dot_dimension_numbers<[1], [0], [0], [1], [0, 0, 1, 1], [], []>} : vector<2x224xf32>, vector<224x112xf32>, vector<2x112xf32> -> vector<2x112xf32>
    %c0_3 = arith.constant 0 : index
    %c0_4 = arith.constant 0 : index
    %3 = vector.load %arg3[%c0_3, %c0_4] : memref<1x112xf32, #tpu.memory_space<vmem>>, vector<1x112xf32>
    %4 = vector.broadcast %3 : vector<1x112xf32> to vector<2x112xf32>
    %5 = arith.addf %2, %4 : vector<2x112xf32>
    %c0_5 = arith.constant 0 : index
    %c0_6 = arith.constant 0 : index
    %6 = vector.load %arg4[%c0_5, %c0_6] : memref<2x112xf32, #tpu.memory_space<vmem>>, vector<2x112xf32>
    tpu.vector_store %arg4[%c0_5, %c0_6], %5 {strides = array<i32>} : memref<2x112xf32, #tpu.memory_space<vmem>>, vector<2x112xf32>,
    return
  }
  func.func @transform_0(%arg0: i32) -> (i32, i32) {
    %c0_i32 = arith.constant 0 : i32
    %c0_i32_0 = arith.constant 0 : i32
    return %arg0, %c0_i32 : i32, i32
  }
  func.func @transform_1(%arg0: i32) -> (i32, i32) {
    %c0_i32 = arith.constant 0 : i32
    %c0_i32_0 = arith.constant 0 : i32
    %c0_i32_1 = arith.constant 0 : i32
    return %c0_i32, %c0_i32_0 : i32, i32
  }
  func.func @transform_2(%arg0: i32) -> (i32, i32) {
    %c0_i32 = arith.constant 0 : i32
    %c0_i32_0 = arith.constant 0 : i32
    %c0_i32_1 = arith.constant 0 : i32
    return %c0_i32, %c0_i32_0 : i32, i32
  }
  func.func @transform_3(%arg0: i32) -> (i32, i32) {
    %c0_i32 = arith.constant 0 : i32
    %c0_i32_0 = arith.constant 0 : i32
    return %arg0, %c0_i32 : i32, i32
  }
}

</mosaic_0001>

<bundles_post_ra>
// kernel: tpu_custom_call.1
= control target key start
LH: loop header
LB: loop body
LE: loop exit
PB: predicated region body
PF: predicated region fallthrough
CT: control target
= control target key end

     0   :  { %8 = vsyncpa [#allocation3], 0  ;;  %s268_s0 = inlined_call_operand.hbm [shape: f32[2,224], index: 0, kind: input, shape index: {}]   ;;  %s269_s1 = inlined_call_operand.hbm [shape: f32[224,112], index: 1, kind: input, shape index: {}]   ;;  %s270_s2 = inlined_call_operand.vmem [shape: f32[1,112], index: 2, kind: input, shape index: {}]   ;;  %s271_s3 = inlined_call_operand.hbm [shape: f32[2,112], index: 3, kind: output, shape index: {}]  }
   0x1   :  { %9 = vsyncpa [#allocation6], 0 }
   0x2   :  { %10 = vsyncpa [#allocation4], 0  ;;  %s16_s14 = sshll.u32 %s268_s0, 4  ;;  %s231_s15 = smov [#allocation2]   ;;  %s17_s14 = int_to_ptr.hbm [resolvable:$true] %s16_s14 }
   0x3   :  { %s18_s16 = sshll.u32 %s231_s15, 4  ;;  %s26_s19 = sshll.u32 %s269_s1, 4  ;;  %s19_s16 = int_to_ptr.vmem [resolvable:$true] %s18_s16  ;;  %s27_s19 = int_to_ptr.hbm [resolvable:$true] %s26_s19 }
   0x4   :  { %21 = dma.hbm_to_vmem [thread:$0]  %s17_s14, 64, %s19_s16, [#allocation3]  }
   0x5   :  { %s232_s20 = smov [#allocation5]   ;;  %s233_s22 = smov 128  }
   0x6   :  { %s28_s21 = sshll.u32 %s232_s20, 4  ;;  %s234_s23 = smov 8   ;;  %s29_s21 = int_to_ptr.vmem [resolvable:$true] %s28_s21 }
   0x7   :  { %34 = dma.hbm_to_vmem [thread:$0]  %s27_s19, 3584, %s29_s21, [#allocation6], %s233_s22, %s233_s22, %s234_s23  }
   0x8   :  { %225 = dma.done.wait [#allocation3], 64  }
   0x9   :  { %226 = vsyncadd [#allocation3], 4294967232 }
   0xa   :  { %227 = dma.done.wait [#allocation6], 3584  }
   0xb   :  { %228 = vsyncadd [#allocation6], 4294963712  ;;  %v61_v0 = vld [vmem:[#allocation5 + $0x78] sm:$0xff]  ;;  %v60_v1 = vld [vmem:[#allocation5 + $0x70] sm:$0xff]  ;;  %vm83_vm0 = vcmask 785408   ;;  %s235_s24 = smov [#allocation7]  }
   0xc   :  { %86 = vmatpush.msra.mxu0 %v61_v0  ;;  %v59_v2 = vld [vmem:[#allocation5 + $0x68] sm:$0xff]  ;;  %v73_v3 = vld [vmem:[#allocation5 + $0xd8] sm:$0xff]  ;;  %v72_v4 = vld [vmem:[#allocation5 + $0xd0] sm:$0xff]  ;;  %s133_s25 = sshll.u32 %s235_s24, 4  ;;  %s135_s28 = sshll.u32 %s271_s3, 4  ;;  %vm126_vm1 = vcmask 910336   ;;  %s134_s25 = int_to_ptr.vmem [resolvable:$true] %s133_s25  ;;  %s136_s28 = int_to_ptr.hbm [resolvable:$true] %s135_s28 }
   0xd   :  { %110 = vmatpush.msra.mxu1 %v73_v3  ;;  %v58_v5 = vld [vmem:[#allocation5 + $0x60] sm:$0xff]  ;;  %v71_v6 = vld [vmem:[#allocation5 + $0xc8] sm:$0xff]  ;;  %v57_v7 = vld [vmem:[#allocation5 + $0x58] sm:$0xff] }
   0xe   :  { %87 = vmatpush.msra.mxu0 %v60_v1  ;;  %v70_v8 = vld [vmem:[#allocation5 + $0xc0] sm:$0xff]  ;;  %v56_v9 = vld [vmem:[#allocation5 + $0x50] sm:$0xff]  ;;  %v69_v10 = vld [vmem:[#allocation5 + $0xb8] sm:$0xff] }
   0xf   :  { %111 = vmatpush.msra.mxu1 %v72_v4  ;;  %v45_v11 = vld [vmem:[#allocation2] sm:$0xf]  ;;  %v55_v12 = vld [vmem:[#allocation5 + $0x48] sm:$0xff]  ;;  %v68_v13 = vld [vmem:[#allocation5 + $0xb0] sm:$0xff] }
  0x10   :  { %88 = vmatpush.msra.mxu0 %v59_v2  ;;  %79 = vst [vmem:[#allocation1] ss:$4 sm:$0xff] %v45_v11  ;;  %v54_v14 = vld [vmem:[#allocation5 + $0x40] sm:$0xff]  ;;  %v67_v15 = vld [vmem:[#allocation5 + $0xa8] sm:$0xff]  ;;  %v53_v16 = vld [vmem:[#allocation5 + $0x38] sm:$0xff] }
  0x11   :  { %112 = vmatpush.msra.mxu1 %v71_v6  ;;  %v66_v17 = vld [vmem:[#allocation5 + $0xa0] sm:$0xff]  ;;  %v52_v18 = vld [vmem:[#allocation5 + $0x30] sm:$0xff]  ;;  %v65_v19 = vld [vmem:[#allocation5 + $0x98] sm:$0xff] }
  0x12   :  { %89 = vmatpush.msra.mxu0 %v58_v5  ;;  %v51_v20 = vld [vmem:[#allocation5 + $0x28] sm:$0xff]  ;;  %v64_v21 = vld [vmem:[#allocation5 + $0x90] sm:$0xff]  ;;  %v50_v22 = vld [vmem:[#allocation5 + $0x20] sm:$0xff] }
  0x13   :  { %113 = vmatpush.msra.mxu1 %v70_v8  ;;  %v63_v23 = vld [vmem:[#allocation5 + $0x88] sm:$0xff]  ;;  %v49_v24 = vld [vmem:[#allocation5 + $0x18] sm:$0xff]  ;;  %v62_v25 = vld [vmem:[#allocation5 + $0x80] sm:$0xff] }
  0x14   :  { %90 = vmatpush.msra.mxu0 %v57_v7  ;;  %v48_v27 = vld [vmem:[#allocation5 + $0x10] sm:$0xff]  ;;  %v47_v28 = vld [vmem:[#allocation5 + $0x8] sm:$0xff]  ;;  %v46_v29 = vld [vmem:[#allocation5] sm:$0xff] }
  0x15   :  { %114 = vmatpush.msra.mxu1 %v69_v10  ;;  %v152_v31 = vld [vmem:[%s270_s2] ss:$0 sm:$0xff] }
  0x16   :  { %91 = vmatpush.msra.mxu0 %v56_v9 }
  0x17   :  { %115 = vmatpush.msra.mxu1 %v68_v13  ;;  %v81_v26 = vld.sshfl [vmem:[#allocation1 + $0x8] sm:$0xff pattern:$0x73625140]  ;;  %v80_v30 = vld.sshfl [vmem:[#allocation1] sm:$0xff pattern:$0x73625140] }
  0x18   :  { %92 = vmatpush.msra.mxu0 %v55_v12 }
  0x19   :  { %116 = vmatpush.msra.mxu1 %v67_v15 }
  0x1a   :  { %93 = vmatpush.msra.mxu0 %v54_v14 }
  0x1b   :  { %117 = vmatpush.msra.mxu1 %v66_v17 }
  0x1c   :  { %94 = vmatpush.msra.mxu0 %v53_v16 }
  0x1d   :  { %118 = vmatpush.msra.mxu1 %v65_v19 }
  0x1e   :  { %95 = vmatpush.msra.mxu0 %v52_v18 }
  0x1f   :  { %119 = vmatpush.msra.mxu1 %v64_v21 }
  0x20   :  { %96 = vmatpush.msra.mxu0 %v51_v20 }
  0x21   :  { %120 = vmatpush.msra.mxu1 %v63_v23 }
  0x22   :  { %97 = vmatpush.msra.mxu0 %v50_v22 }
  0x23   :  { %121 = vmatpush.msra.mxu1 %v62_v25 }
  0x24   :  { %98 = vmatpush.msra.mxu0 %v49_v24  ;;  %146 = vmatmul.msk.f32.vlgmr.msra.gmra.mxu1 %vm83_vm0, %v81_v26 }
  0x26   :  { %99 = vmatpush.msra.mxu0 %v48_v27 }
  0x28   :  { %100 = vmatpush.msra.mxu0 %v47_v28 }
  0x2a   :  { %101 = vmatpush.msra.mxu0 %v46_v29 }
  0x2b   :  { %102 = vmatmul.f32.vlgmr.msra.gmra.mxu0 %v80_v30 }
  0xa1   :  { %v123_v33 = vpop.f32.mrf.mxu1 }
  0xa8   :  { %v103_v32 = vpop.f32.mrf.mxu0 }
  0xa9   :  { %v104_v34 = vadd.f32 %v152_v31, %v103_v32 }
  0xab   :  { %v124_v35 = vadd.f32 %v123_v33, %v104_v34 }
  0xad   :  { %127 = vst.msk [vmem:[#allocation7] sm:$0x3] %vm126_vm1, %v124_v35 }
  0xae   :  { %138 = dma.vmem_to_hbm [thread:$0]  %s134_s25, 32, %s136_s28, [#allocation4]  }
  0xaf   :  { %229 = dma.done.wait [#allocation4], 32  }
  0xb0   :  { %230 = vsyncadd [#allocation4], 4294967264 }
  0xb1   :  { %143 = vsyncpa [#allocation3], 1 }
  0xb2   :  { %144 = vsyncpa [#allocation6], 1 }
  0xb3   :  { %145 = vsyncpa [#allocation4], 1 }

</bundles_post_ra>
